<compile_context>
chip_gen: v7x
topology: tpu7x:2x2x1
jax: 0.10.0
libtpu: 0.0.40
codegen_flags: <defaults>
</compile_context>

<pallas_src>
import jax
import jax.numpy as jnp
from jax.experimental import pallas as pl
from jax.experimental.pallas import tpu as pltpu


# ~2 MiB per block: 2 double-buffered input tiles + 2 output tiles stay well
# under the scoped-VMEM default on every TPU generation (16 MiB v5e,
# 32 MiB v6e, 32-of-64 MiB v7x) while amortizing the ~600-cycle grid-step cost.
_TARGET_BLOCK_BYTES = 2 << 20


def _round_down(x, m):
    return max(m, (x // m) * m)


# ----------------------------------------------------------------------------
# Pallas kernels
# ----------------------------------------------------------------------------

def _mask_mul_kernel(x_ref, w_ref, o_ref):
    # x_ref: [TR, CB] tile of the flattened input; w_ref: [TR, 1] per-row scale.
    o_ref[...] = x_ref[...] * w_ref[...]


def mask_multiply(x_nchw, w_c):
    """output[n, c, h, w] = x[n, c, h, w] * w_c[c]   (NCHW, per-channel scale)."""
    N, C, H, W = x_nchw.shape
    R, HW = N * C, H * W
    x2d = x_nchw.reshape(R, HW)
    # per-row (= per (n, c) pair) scale, column vector for sublane broadcast
    wcol = jnp.broadcast_to(w_c.astype(x2d.dtype)[None, :], (N, C)).reshape(R, 1)

    itemsize = jnp.dtype(x2d.dtype).itemsize
    row_bytes = HW * itemsize

    # Lane tile: full HW when a row fits the budget (always legal regardless of
    # 128-divisibility), otherwise a large lane-dense multiple of 128.
    if row_bytes <= _TARGET_BLOCK_BYTES or HW < 128:
        CB = HW
    else:
        CB = _round_down(min(HW, _TARGET_BLOCK_BYTES // (8 * itemsize)), 128)

    # Row tile: multiple of 8 sublanes, sized so each block is ~_TARGET_BLOCK_BYTES.
    rows_fit = _TARGET_BLOCK_BYTES // max(1, CB * itemsize)
    if rows_fit >= R:
        TR = R
    else:
        TR = min(R, max(8, (rows_fit // 8) * 8))

    grid = (pl.cdiv(R, TR), pl.cdiv(HW, CB))

    out2d = pl.pallas_call(
        _mask_mul_kernel,
        out_shape=jax.ShapeDtypeStruct((R, HW), x2d.dtype),
        grid=grid,
        in_specs=[
            pl.BlockSpec((TR, CB), lambda i, j: (i, j)),
            pl.BlockSpec((TR, 1), lambda i, j: (i, 0)),
        ],
        out_specs=pl.BlockSpec((TR, CB), lambda i, j: (i, j)),
        compiler_params=pltpu.CompilerParams(
            # Pure elementwise: every block independent -> lets v7x shard the
            # grid across its 2 TensorCores; neutral on single-TC v5e/v6e.
            dimension_semantics=("parallel", "parallel")),
    )(x2d, wcol)
    return out2d.reshape(N, C, H, W)


def _kse_abs_colsum_kernel(w_ref, o_ref):
    # w_ref: [TRO, cin*kh*kw] tile of the conv weight in its native dtype;
    # o_ref: [1, cin*kh*kw] f32 accumulator, resident across the cout grid axis.
    @pl.when(pl.program_id(0) == 0)
    def _():
        o_ref[...] = jnp.zeros_like(o_ref)

    o_ref[...] += jnp.sum(jnp.abs(w_ref[...].astype(jnp.float32)),
                          axis=0, keepdims=True)


def kse_abs_colsum(weight_kse):
    """sum over cout of |W| -> shape (cin*kh*kw,), f32.

    Uses W reshaped row-major (free, no HBM transpose copy) to (cout, cin*kh*kw);
    the f32 cast happens in-kernel so bf16 weights are read at native width, and
    the reduction is a sublane reduce with a lane-dense output.
    """
    cout, cin, kh, kw = weight_kse.shape
    K = cin * kh * kw
    w2d = weight_kse.reshape(cout, K)
    itemsize = jnp.dtype(w2d.dtype).itemsize

    # Row tile over cout: a multiple of 8 that divides cout and keeps each block
    # around the VMEM budget; otherwise fall back to the full extent (legal).
    TRO = cout
    if cout % 8 == 0:
        max_rows = _round_down(_TARGET_BLOCK_BYTES // max(1, K * itemsize), 8)
        for cand in range(min(cout, max_rows), 7, -8):
            if cout % cand == 0:
                TRO = cand
                break

    colsum = pl.pallas_call(
        _kse_abs_colsum_kernel,
        out_shape=jax.ShapeDtypeStruct((1, K), jnp.float32),
        grid=(cout // TRO,),
        in_specs=[pl.BlockSpec((TRO, K), lambda i: (i, 0))],
        out_specs=pl.BlockSpec((1, K), lambda i: (0, 0)),
        compiler_params=pltpu.CompilerParams(
            dimension_semantics=("arbitrary",)),   # reduction axis
    )(w2d)
    return colsum[0]


# ----------------------------------------------------------------------------
# KSE glue (tiny per-channel statistics: normalize / sqrt / sort / threshold)
# ----------------------------------------------------------------------------

def kse_indicator(weight_kse):
    cout, cin, kh, kw = weight_kse.shape
    colsum = kse_abs_colsum(weight_kse)                     # Pallas reduction
    ks = jnp.sum(colsum.reshape(cin, kh * kw), axis=-1)     # tiny finish in JAX
    # NOTE: matches the PyTorch reference; divides by zero if all sums are equal.
    ks = (ks - jnp.min(ks)) / (jnp.max(ks) - jnp.min(ks))
    ind = jnp.sqrt(ks)
    ind = (ind - jnp.min(ind)) / (jnp.max(ind) - jnp.min(ind))
    # TODO(synk): argsort/threshold selection has no clean Pallas equivalent; done in plain JAX.
    order = jnp.argsort(ind)
    thre = ind[order[int(cin * 0.2)]]
    return ind, thre


# ----------------------------------------------------------------------------
# Mask module forward (functional)
# ----------------------------------------------------------------------------

@jax.jit
def _forward_with_kse(mask_weight, x, weight_kse):
    ind, thre = kse_indicator(weight_kse)
    # weight.data[:, i, :, :] = 1 where indicator[i] > threshold
    w = jnp.where(ind > thre, jnp.float32(1.0), mask_weight.astype(jnp.float32))
    return mask_multiply(x, w)


@jax.jit
def _forward_plain(mask_weight, x):
    return mask_multiply(x, mask_weight.astype(jnp.float32))


epoch_g = 0  # mirrors the module-level global in the PyTorch source


def mask_forward(mask_weight, x, weight_kse, planes=None):
    global epoch_g
    if planes is None:
        return x * mask_weight
    epoch_g = epoch_g + 1
    use_kse = 0 < epoch_g < 17        # Python branch: kept out of the traced path
    if epoch_g == 7856:
        epoch_g = 0
    if use_kse:
        # TODO(synk): the PyTorch module permanently overwrites weight.data with 1
        # for gated channels (persists after epoch 17); this functional port
        # re-applies the gating per call instead of mutating the parameter.
        return _forward_with_kse(mask_weight, x, weight_kse)
    return _forward_plain(mask_weight, x)


# ----------------------------------------------------------------------------
# Demo / self-check
# ----------------------------------------------------------------------------

if __name__ == "__main__":
    key = jax.random.PRNGKey(0)
    k1, k2, k3 = jax.random.split(key, 3)

    N, C, H, W = 2, 4, 16, 16          # input is NCHW, planes = C
    COUT, KH, KW = 8, 3, 3             # conv weight whose KSE stats gate the mask

    x = jax.random.normal(k1, (N, C, H, W), dtype=jnp.float32)
    weight_kse = jax.random.normal(k2, (COUT, C, KH, KW), dtype=jnp.float32)
    # deterministic synthetic Mask parameter (init_value of length `planes`)
    mask_weight = 0.25 + 0.5 * jax.random.uniform(k3, (C,), dtype=jnp.float32)

    out = mask_forward(mask_weight, x, weight_kse, planes=C)
    out = jax.block_until_ready(out)

    # pure-JAX reference for verification
    ks = jnp.sum(jnp.abs(weight_kse), axis=(0, 2, 3))
    ks = (ks - jnp.min(ks)) / (jnp.max(ks) - jnp.min(ks))
    ind = jnp.sqrt(ks)
    ind = (ind - jnp.min(ind)) / (jnp.max(ind) - jnp.min(ind))
    thre = ind[jnp.argsort(ind)[int(C * 0.2)]]
    w_ref = jnp.where(ind > thre, 1.0, mask_weight)
    ref = x * w_ref[None, :, None, None]

    assert out.shape == (N, C, H, W) and out.dtype == jnp.float32
    assert jnp.allclose(out, ref, atol=1e-6, rtol=1e-6)
    print("KERNEL_OK")
</pallas_src>

<mosaic_0001>
module attributes {stable_mosaic.version = 11 : i64} {
  func.func @_kse_abs_colsum_kernel(%arg0: i32, %arg1: memref<8x36xf32, #tpu.memory_space<vmem>>, %arg2: memref<1x36xf32, #tpu.memory_space<vmem>>) attributes {dimension_semantics = [#tpu.dimension_semantics<arbitrary>], iteration_bounds = array<i64: 1>, scalar_prefetch = 0 : i64, scratch_operands = 0 : i64, tpu.core_type = #tpu.core_type<tc>, window_params = [{transform_indices = @transform_0, window_bounds = array<i64: 8, 36>}, {pipeline_mode = #tpu.pipeline_mode<synchronous>, transform_indices = @transform_1, window_bounds = array<i64: 1, 36>}]} {
    %c0_i32 = arith.constant 0 : i32
    %0 = arith.cmpi eq, %arg0, %c0_i32 : i32
    %1 = arith.extui %0 : i1 to i32
    %c0_i32_0 = arith.constant 0 : i32
    %2 = arith.cmpi ne, %1, %c0_i32_0 : i32
    scf.if %2 {
      %cst_6 = arith.constant 0.000000e+00 : f32
      %10 = vector.broadcast %cst_6 : f32 to vector<1x36xf32>
      %c0_7 = arith.constant 0 : index
      %c0_8 = arith.constant 0 : index
      %11 = vector.load %arg2[%c0_7, %c0_8] : memref<1x36xf32, #tpu.memory_space<vmem>>, vector<1x36xf32>
      tpu.vector_store %arg2[%c0_7, %c0_8], %10 {strides = array<i32>} : memref<1x36xf32, #tpu.memory_space<vmem>>, vector<1x36xf32>,
    } else {
    }
    %c0 = arith.constant 0 : index
    %c0_1 = arith.constant 0 : index
    %3 = vector.load %arg2[%c0, %c0_1] : memref<1x36xf32, #tpu.memory_space<vmem>>, vector<1x36xf32>
    %c0_2 = arith.constant 0 : index
    %c0_3 = arith.constant 0 : index
    %4 = vector.load %arg1[%c0_2, %c0_3] : memref<8x36xf32, #tpu.memory_space<vmem>>, vector<8x36xf32>
    %5 = math.absf %4 : vector<8x36xf32>
    %cst = arith.constant dense<0.000000e+00> : vector<36xf32>
    %6 = vector.multi_reduction <add>, %5, %cst [0] : vector<8x36xf32> to vector<36xf32>
    %7 = vector.shape_cast %6 : vector<36xf32> to vector<1x36xf32>
    %8 = arith.addf %3, %7 : vector<1x36xf32>
    %c0_4 = arith.constant 0 : index
    %c0_5 = arith.constant 0 : index
    %9 = vector.load %arg2[%c0_4, %c0_5] : memref<1x36xf32, #tpu.memory_space<vmem>>, vector<1x36xf32>
    tpu.vector_store %arg2[%c0_4, %c0_5], %8 {strides = array<i32>} : memref<1x36xf32, #tpu.memory_space<vmem>>, vector<1x36xf32>,
    return
  }
  func.func @transform_0(%arg0: i32) -> (i32, i32) {
    %c0_i32 = arith.constant 0 : i32
    %c0_i32_0 = arith.constant 0 : i32
    return %arg0, %c0_i32 : i32, i32
  }
  func.func @transform_1(%arg0: i32) -> (i32, i32) {
    %c0_i32 = arith.constant 0 : i32
    %c0_i32_0 = arith.constant 0 : i32
    %c0_i32_1 = arith.constant 0 : i32
    return %c0_i32, %c0_i32_0 : i32, i32
  }
}

module attributes {stable_mosaic.version = 11 : i64} {
  func.func @_mask_mul_kernel(%arg0: i32, %arg1: i32, %arg2: memref<8x256xf32, #tpu.memory_space<vmem>>, %arg3: memref<8x1xf32, #tpu.memory_space<vmem>>, %arg4: memref<8x256xf32, #tpu.memory_space<vmem>>) attributes {dimension_semantics = [#tpu.dimension_semantics<parallel>, #tpu.dimension_semantics<parallel>], iteration_bounds = array<i64: 1, 1>, scalar_prefetch = 0 : i64, scratch_operands = 0 : i64, tpu.core_type = #tpu.core_type<tc>, window_params = [{transform_indices = @transform_0, window_bounds = array<i64: 8, 256>}, {transform_indices = @transform_1, window_bounds = array<i64: 8, 1>}, {transform_indices = @transform_2, window_bounds = array<i64: 8, 256>}]} {
    %c0 = arith.constant 0 : index
    %c0_0 = arith.constant 0 : index
    %0 = vector.load %arg2[%c0, %c0_0] : memref<8x256xf32, #tpu.memory_space<vmem>>, vector<8x256xf32>
    %c0_1 = arith.constant 0 : index
    %c0_2 = arith.constant 0 : index
    %1 = vector.load %arg3[%c0_1, %c0_2] : memref<8x1xf32, #tpu.memory_space<vmem>>, vector<8x1xf32>
    %2 = vector.broadcast %1 : vector<8x1xf32> to vector<8x256xf32>
    %3 = arith.mulf %0, %2 : vector<8x256xf32>
    %c0_3 = arith.constant 0 : index
    %c0_4 = arith.constant 0 : index
    %4 = vector.load %arg4[%c0_3, %c0_4] : memref<8x256xf32, #tpu.memory_space<vmem>>, vector<8x256xf32>
    tpu.vector_store %arg4[%c0_3, %c0_4], %3 {strides = array<i32>} : memref<8x256xf32, #tpu.memory_space<vmem>>, vector<8x256xf32>,
    return
  }
  func.func @transform_0(%arg0: i32, %arg1: i32) -> (i32, i32) {
    %c0_i32 = arith.constant 0 : i32
    return %arg0, %arg1 : i32, i32
  }
  func.func @transform_1(%arg0: i32, %arg1: i32) -> (i32, i32) {
    %c0_i32 = arith.constant 0 : i32
    %c0_i32_0 = arith.constant 0 : i32
    return %arg0, %c0_i32 : i32, i32
  }
  func.func @transform_2(%arg0: i32, %arg1: i32) -> (i32, i32) {
    %c0_i32 = arith.constant 0 : i32
    return %arg0, %arg1 : i32, i32
  }
}

</mosaic_0001>

<bundles_post_ra>
// kernel: squeeze.3
= control target key start
LH: loop header
LB: loop body
LE: loop exit
PB: predicated region body
PF: predicated region fallthrough
CT: control target
= control target key end

     0   :  { %s37_s8 = smov 101   ;;  %vm7_vm0 = vcmask 72704   ;;  %s38_s9 = smov 110   ;;  %s55_s0 = inlined_call_operand.vmem [shape: f32[36], index: 0, kind: input, shape index: {}]   ;;  %s56_s1 = inlined_call_operand.vmem [shape: f32[4,9], index: 1, kind: output, shape index: {}]  }
   0x1   :  { %v4_v0 = vld [vmem:[%s55_s0] sm:$0x1]  ;;  %s36_s0 = smov 119  }
   0x2   :  { %5 = vst [vmem:[#allocation1] sm:$0x1] %v4_v0 }
   0x9   :  { %v9_v1 = vld [vmem:[#allocation1] sm:$0x1]  }
   0xa   :  { %v21_v2 = vld [vmem:[#allocation1] sm:$0x1]   ;;  %10 = vrot.lane.b32.xlu0 %v9_v1, %s36_s0 }
   0xb   :  { %22 = vrot.lane.b32.xlu1 %v21_v2, %s37_s8  ;;  %v6_v3 = vld [vmem:[#allocation1] sm:$0x1]  }
   0xc   :  { %v15_v4 = vld [vmem:[#allocation1] sm:$0x1]   ;;  %8 = vst.msk [vmem:[#allocation0] sm:$0x1] %vm7_vm0, %v6_v3  }
   0xe   :  { %16 = vrot.lane.b32.xlu0 %v15_v4, %s38_s9 }
  0x7c   :  { %v11_v5 = vpop.permute.xlu0 %10  }
  0x7d   :  { %v23_v6 = vpop.permute.xlu1 %22   ;;  %14 = vst.msk [vmem:[#allocation0 + $0x1] sm:$0x1] %vm7_vm0, %v11_v5  }
  0x7e   :  { %26 = vst.msk [vmem:[#allocation0 + $0x3] sm:$0x1] %vm7_vm0, %v23_v6  }
  0x80   :  { %v17_v7 = vpop.permute.xlu0 %16  }
  0x81   :  { %20 = vst.msk [vmem:[#allocation0 + $0x2] sm:$0x1] %vm7_vm0, %v17_v7  }
  0x88   :  { %v30_v8 = vld [vmem:[#allocation0] sm:$0xf] }
  0x89   :  { %32 = vst [vmem:[%s56_s1] sm:$0xf] %v30_v8 }

// kernel: _forward_with_kse.2
= control target key start
LH: loop header
LB: loop body
LE: loop exit
PB: predicated region body
PF: predicated region fallthrough
CT: control target
= control target key end

     0   :  { %vm12_vm0 = vcmask 286720   ;;  %v33_v0 = vmov 0.0   ;;  %vm17_vm1 = vcmask 293888   ;;  %s56_s0 = inlined_call_operand.vmem [shape: f32[8,36], index: 0, kind: input, shape index: {}]   ;;  %s57_s1 = inlined_call_operand.vmem [shape: f32[1,36], index: 1, kind: output, shape index: {}]  }
   0x1   :  { %13 = vst.msk [vmem:[%s57_s1] sm:$0x1] %vm12_vm0, %v33_v0  ;;  %v15_v1 = vld [vmem:[%s56_s0] sm:$0xff] }
   0x2   :  { %v16_v2 = vand.u32 2147483647, %v15_v1 }
   0x4   :  { %v18_v3 = vsel %vm17_vm1, %v16_v2, 0.0 }
   0x5   :  { %v19_v4 = vrot.slane %v18_v3, 4 }
   0x7   :  { %v20_v5 = vadd.f32 %v19_v4, %v18_v3 }
   0x8   :  { %v14_v9 = vld [vmem:[%s57_s1] sm:$0x1] }
   0x9   :  { %v21_v6 = vrot.slane %v20_v5, 2 }
   0xb   :  { %v22_v7 = vadd.f32 %v21_v6, %v20_v5 }
   0xd   :  { %v23_v8 = vrot.slane %v22_v7, 1 }
   0xf   :  { %v24_v10 = vadd.f32 %v23_v8, %v22_v7 }
  0x11   :  { %v25_v11 = vadd.f32 %v24_v10, %v14_v9 }
  0x13   :  { %27 = vst.msk [vmem:[%s57_s1] sm:$0x1] %vm12_vm0, %v25_v11 }

// kernel: _forward_with_kse.3
= control target key start
LH: loop header
LB: loop body
LE: loop exit
PB: predicated region body
PF: predicated region fallthrough
CT: control target
= control target key end

     0   :  { %v29_v0 = vmov 0   ;;  %s60_s1 = inlined_call_operand.vmem [shape: f32[8,1], index: 1, kind: input, shape index: {}]   ;;  %s61_s0 = inlined_call_operand.vmem [shape: f32[8,256], index: 0, kind: input, shape index: {}]   ;;  %s62_s2 = inlined_call_operand.vmem [shape: f32[8,256], index: 2, kind: output, shape index: {}]  }
   0x1   :  { %28 = vset.pattern.permute.xlu0 %v29_v0  ;;  %v13_v1 = vld [vmem:[%s60_s1] sm:$0xff]  ;;  %v12_v3 = vld [vmem:[%s61_s0 + $0x8] sm:$0xff] }
   0x2   :  { %16 = vperm.xlu0 %28, %v13_v1   ;;  %v11_v2 = vld [vmem:[%s61_s0] sm:$0xff] }
  0x81   :  { %v17_v4 = vpop.permute.xlu0 %16 }
  0x82   :  { %v19_v5 = vmul.f32 %v17_v4, %v11_v2  ;;  %v20_v6 = vmul.f32 %v17_v4, %v12_v3 }
  0x84   :  { %21 = vst [vmem:[%s62_s2] sm:$0xff] %v19_v5  ;;  %22 = vst [vmem:[%s62_s2 + $0x8] sm:$0xff] %v20_v6 }

</bundles_post_ra>
